<compile_context>
chip_gen: v6e
topology: v6e:2x2x1
jax: 0.10.0
libtpu: 0.0.40
codegen_flags: <defaults>
</compile_context>

<pallas_src>
import functools

import jax
import jax.numpy as jnp
from jax.experimental import pallas as pl
from jax.experimental.pallas import tpu as pltpu


def _temporal_block_kernel(x_ref, w1_ref, b1_ref, w2_ref, b2_ref, o_ref, *,
                           K, dilation, padding, C_in, C_mid, C_out, L):
    """Fused TemporalBlock forward for one batch sample.

    x_ref:  (C_in, L + padding)   causally left-padded input (channels=sublanes,
                                  time=lanes)
    w1_ref: (C_out, K * C_in)     folded conv1 weight, column j = (tap k, in ch i)
    b1_ref: (C_out, 1)
    w2_ref: (C_out, K * C_mid)    folded conv2 weight
    b2_ref: (C_out, 1)
    o_ref:  (C_out, L)            output
    """
    x = x_ref[...]                                     # (C_in, L + padding)
    w1 = w1_ref[...]                                   # (C_out, K*C_in)
    w2 = w2_ref[...]                                   # (C_out, K*C_mid)

    # ---- Stage 1: conv1 + bias + ReLU (dropout == identity) ---------------
    acc1 = jnp.zeros((C_out, L), jnp.float32)
    for k in range(K):
        off = k * dilation
        for i in range(C_in):
            j = k * C_in + i
            col = w1[:, j:j + 1]                       # (C_out, 1): lane bcast
            row = x[i, off:off + L][None, :]           # (1, L): sublane bcast
            acc1 = acc1 + col * row                    # rank-1 VPU FMA
    h = jnp.maximum(acc1 + b1_ref[...], 0.0)           # (C_mid, L)

    # Causal left-pad of h kept in registers (no VMEM scratch round trip).
    if padding > 0:
        h_pad = jnp.concatenate(
            [jnp.zeros((C_mid, padding), jnp.float32), h], axis=1)
    else:
        h_pad = h                                      # (C_mid, L + padding)

    # ---- Stage 2: conv2 + bias + ReLU --------------------------------------
    acc2 = jnp.zeros((C_out, L), jnp.float32)
    for k in range(K):
        off = k * dilation
        for i in range(C_mid):
            j = k * C_mid + i
            col = w2[:, j:j + 1]                       # (C_out, 1)
            row = h_pad[i, off:off + L][None, :]       # (1, L)
            acc2 = acc2 + col * row
    y = jnp.maximum(acc2 + b2_ref[...], 0.0)
    # Module's final ReLU: relu(relu(.)) == relu(.), y is already >= 0.
    o_ref[...] = y.astype(o_ref.dtype)


def weight_norm_fold(v, g):
    """Effective Conv1d weight for torch weight_norm (dim=0)."""
    norm = jnp.sqrt(jnp.sum(v * v, axis=(1, 2), keepdims=True))
    return g * v / norm


def temporal_block_forward(x, params, *, dilation, padding):
    """TemporalBlock.forward(x) for x in PyTorch NCL layout (N, C_in, L)."""
    N, C_in, L = x.shape
    w1 = weight_norm_fold(params["v1"], params["g1"])      # (C_out, C_in, K)
    w2 = weight_norm_fold(params["v2"], params["g2"])      # (C_out, C_mid, K)
    C_out, _, K = w1.shape
    C_mid = w2.shape[1]
    assert C_mid == C_out

    L_pad = L + padding
    # Left-only causal padding (the torch conv's right pad is chomped anyway).
    x_pad = jnp.pad(x, ((0, 0), (0, 0), (padding, 0)))     # (N, C_in, L_pad)

    # Flat 2D weight slabs: column index j = k * C_in + i  (tap-major).
    w1_2d = jnp.transpose(w1, (0, 2, 1)).reshape(C_out, K * C_in)
    w2_2d = jnp.transpose(w2, (0, 2, 1)).reshape(C_out, K * C_mid)
    b1 = params["b1"].reshape(C_out, 1)
    b2 = params["b2"].reshape(C_out, 1)

    kernel = functools.partial(
        _temporal_block_kernel, K=K, dilation=dilation, padding=padding,
        C_in=C_in, C_mid=C_mid, C_out=C_out, L=L)

    out = pl.pallas_call(
        kernel,
        out_shape=jax.ShapeDtypeStruct((N, C_out, L), x.dtype),
        grid=(N,),
        in_specs=[
            pl.BlockSpec((None, C_in, L_pad), lambda n: (n, 0, 0)),
            pl.BlockSpec((C_out, K * C_in), lambda n: (0, 0)),
            pl.BlockSpec((C_out, 1), lambda n: (0, 0)),
            pl.BlockSpec((C_out, K * C_mid), lambda n: (0, 0)),
            pl.BlockSpec((C_out, 1), lambda n: (0, 0)),
        ],
        out_specs=pl.BlockSpec((None, C_out, L), lambda n: (n, 0, 0)),
        compiler_params=pltpu.CompilerParams(
            dimension_semantics=("parallel",)),
    )(x_pad, w1_2d, b1, w2_2d, b2)

    # Output is already in PyTorch NCL layout (N, C_out, L).
    return out


def _reference_forward(x, params, *, dilation, padding):
    """Pure-JAX reference (lax conv) for a silent correctness check."""
    L = x.shape[-1]

    def conv_block(x, v, g, b):
        w = weight_norm_fold(v, g)
        y = jax.lax.conv_general_dilated(
            x, w, window_strides=(1,), padding=[(padding, padding)],
            rhs_dilation=(dilation,), dimension_numbers=("NCH", "OIH", "NCH"))
        y = y + b[None, :, None]
        y = y[:, :, :L]                 # Chomp1d (robust even if padding == 0)
        return jnp.maximum(y, 0.0)      # ReLU (dropout = identity)

    h = conv_block(x, params["v1"], params["g1"], params["b1"])
    h = conv_block(h, params["v2"], params["g2"], params["b2"])
    return jnp.maximum(h, 0.0)


if __name__ == "__main__":
    # Module hyperparameters (consistent with TemporalBlock's constructor).
    n_inputs, n_outputs = 4, 8
    kernel_size, stride, dilation = 3, 1, 2
    padding = (kernel_size - 1) * dilation      # standard causal TCN padding = 4
    batch, length = 2, 16

    key = jax.random.PRNGKey(0)
    k_x, k_v1, k_g1, k_b1, k_v2, k_g2, k_b2 = jax.random.split(key, 7)

    x = jax.random.normal(k_x, (batch, n_inputs, length), dtype=jnp.float32)

    params = {
        "v1": jax.random.normal(k_v1, (n_outputs, n_inputs, kernel_size), jnp.float32) * 0.3,
        "g1": jax.random.uniform(k_g1, (n_outputs, 1, 1), jnp.float32, 0.5, 1.5),
        "b1": jax.random.normal(k_b1, (n_outputs,), jnp.float32) * 0.1,
        "v2": jax.random.normal(k_v2, (n_outputs, n_outputs, kernel_size), jnp.float32) * 0.3,
        "g2": jax.random.uniform(k_g2, (n_outputs, 1, 1), jnp.float32, 0.5, 1.5),
        "b2": jax.random.normal(k_b2, (n_outputs,), jnp.float32) * 0.1,
    }

    out = temporal_block_forward(x, params, dilation=dilation, padding=padding)
    out = jax.block_until_ready(out)

    # Silent correctness check against a pure-JAX reference.
    ref = _reference_forward(x, params, dilation=dilation, padding=padding)
    assert out.shape == (batch, n_outputs, length)
    assert jnp.allclose(out, ref, atol=1e-5, rtol=1e-5)

    print("KERNEL_OK")
</pallas_src>

<mosaic_0001>
module attributes {stable_mosaic.version = 11 : i64} {
  func.func @_temporal_block_kernel(%arg0: i32, %arg1: memref<1x4x20xf32, #tpu.memory_space<vmem>>, %arg2: memref<8x12xf32, #tpu.memory_space<vmem>>, %arg3: memref<8x1xf32, #tpu.memory_space<vmem>>, %arg4: memref<8x24xf32, #tpu.memory_space<vmem>>, %arg5: memref<8x1xf32, #tpu.memory_space<vmem>>, %arg6: memref<1x8x16xf32, #tpu.memory_space<vmem>>) attributes {dimension_semantics = [#tpu.dimension_semantics<parallel>], iteration_bounds = array<i64: 2>, scalar_prefetch = 0 : i64, scratch_operands = 0 : i64, tpu.core_type = #tpu.core_type<tc>, window_params = [{transform_indices = @transform_0, window_bounds = array<i64: 1, 4, 20>}, {pipeline_mode = #tpu.pipeline_mode<synchronous>, transform_indices = @transform_1, window_bounds = array<i64: 8, 12>}, {pipeline_mode = #tpu.pipeline_mode<synchronous>, transform_indices = @transform_2, window_bounds = array<i64: 8, 1>}, {pipeline_mode = #tpu.pipeline_mode<synchronous>, transform_indices = @transform_3, window_bounds = array<i64: 8, 24>}, {pipeline_mode = #tpu.pipeline_mode<synchronous>, transform_indices = @transform_4, window_bounds = array<i64: 8, 1>}, {transform_indices = @transform_5, window_bounds = array<i64: 1, 8, 16>}]} {
    %c0 = arith.constant 0 : index
    %c0_0 = arith.constant 0 : index
    %c0_1 = arith.constant 0 : index
    %0 = vector.load %arg1[%c0, %c0_0, %c0_1] : memref<1x4x20xf32, #tpu.memory_space<vmem>>, vector<1x4x20xf32>
    %1 = vector.shape_cast %0 : vector<1x4x20xf32> to vector<4x20xf32>
    %c0_2 = arith.constant 0 : index
    %c0_3 = arith.constant 0 : index
    %2 = vector.load %arg2[%c0_2, %c0_3] : memref<8x12xf32, #tpu.memory_space<vmem>>, vector<8x12xf32>
    %c0_4 = arith.constant 0 : index
    %c0_5 = arith.constant 0 : index
    %3 = vector.load %arg4[%c0_4, %c0_5] : memref<8x24xf32, #tpu.memory_space<vmem>>, vector<8x24xf32>
    %cst = arith.constant 0.000000e+00 : f32
    %4 = vector.broadcast %cst : f32 to vector<8x16xf32>
    %5 = vector.extract_strided_slice %2 {offsets = [0, 0], sizes = [8, 1], strides = [1, 1]} : vector<8x12xf32> to vector<8x1xf32>
    %6 = vector.extract_strided_slice %1 {offsets = [0, 0], sizes = [1, 16], strides = [1, 1]} : vector<4x20xf32> to vector<1x16xf32>
    %7 = vector.shape_cast %6 : vector<1x16xf32> to vector<16xf32>
    %8 = vector.shape_cast %7 : vector<16xf32> to vector<1x16xf32>
    %9 = vector.broadcast %5 : vector<8x1xf32> to vector<8x16xf32>
    %10 = vector.broadcast %8 : vector<1x16xf32> to vector<8x16xf32>
    %11 = arith.mulf %9, %10 : vector<8x16xf32>
    %12 = arith.addf %4, %11 : vector<8x16xf32>
    %13 = vector.extract_strided_slice %2 {offsets = [0, 1], sizes = [8, 1], strides = [1, 1]} : vector<8x12xf32> to vector<8x1xf32>
    %14 = vector.extract_strided_slice %1 {offsets = [1, 0], sizes = [1, 16], strides = [1, 1]} : vector<4x20xf32> to vector<1x16xf32>
    %15 = vector.shape_cast %14 : vector<1x16xf32> to vector<16xf32>
    %16 = vector.shape_cast %15 : vector<16xf32> to vector<1x16xf32>
    %17 = vector.broadcast %13 : vector<8x1xf32> to vector<8x16xf32>
    %18 = vector.broadcast %16 : vector<1x16xf32> to vector<8x16xf32>
    %19 = arith.mulf %17, %18 : vector<8x16xf32>
    %20 = arith.addf %12, %19 : vector<8x16xf32>
    %21 = vector.extract_strided_slice %2 {offsets = [0, 2], sizes = [8, 1], strides = [1, 1]} : vector<8x12xf32> to vector<8x1xf32>
    %22 = vector.extract_strided_slice %1 {offsets = [2, 0], sizes = [1, 16], strides = [1, 1]} : vector<4x20xf32> to vector<1x16xf32>
    %23 = vector.shape_cast %22 : vector<1x16xf32> to vector<16xf32>
    %24 = vector.shape_cast %23 : vector<16xf32> to vector<1x16xf32>
    %25 = vector.broadcast %21 : vector<8x1xf32> to vector<8x16xf32>
    %26 = vector.broadcast %24 : vector<1x16xf32> to vector<8x16xf32>
    %27 = arith.mulf %25, %26 : vector<8x16xf32>
    %28 = arith.addf %20, %27 : vector<8x16xf32>
    %29 = vector.extract_strided_slice %2 {offsets = [0, 3], sizes = [8, 1], strides = [1, 1]} : vector<8x12xf32> to vector<8x1xf32>
    %30 = vector.extract_strided_slice %1 {offsets = [3, 0], sizes = [1, 16], strides = [1, 1]} : vector<4x20xf32> to vector<1x16xf32>
    %31 = vector.shape_cast %30 : vector<1x16xf32> to vector<16xf32>
    %32 = vector.shape_cast %31 : vector<16xf32> to vector<1x16xf32>
    %33 = vector.broadcast %29 : vector<8x1xf32> to vector<8x16xf32>
    %34 = vector.broadcast %32 : vector<1x16xf32> to vector<8x16xf32>
    %35 = arith.mulf %33, %34 : vector<8x16xf32>
    %36 = arith.addf %28, %35 : vector<8x16xf32>
    %37 = vector.extract_strided_slice %2 {offsets = [0, 4], sizes = [8, 1], strides = [1, 1]} : vector<8x12xf32> to vector<8x1xf32>
    %38 = vector.extract_strided_slice %1 {offsets = [0, 2], sizes = [1, 16], strides = [1, 1]} : vector<4x20xf32> to vector<1x16xf32>
    %39 = vector.shape_cast %38 : vector<1x16xf32> to vector<16xf32>
    %40 = vector.shape_cast %39 : vector<16xf32> to vector<1x16xf32>
    %41 = vector.broadcast %37 : vector<8x1xf32> to vector<8x16xf32>
    %42 = vector.broadcast %40 : vector<1x16xf32> to vector<8x16xf32>
    %43 = arith.mulf %41, %42 : vector<8x16xf32>
    %44 = arith.addf %36, %43 : vector<8x16xf32>
    %45 = vector.extract_strided_slice %2 {offsets = [0, 5], sizes = [8, 1], strides = [1, 1]} : vector<8x12xf32> to vector<8x1xf32>
    %46 = vector.extract_strided_slice %1 {offsets = [1, 2], sizes = [1, 16], strides = [1, 1]} : vector<4x20xf32> to vector<1x16xf32>
    %47 = vector.shape_cast %46 : vector<1x16xf32> to vector<16xf32>
    %48 = vector.shape_cast %47 : vector<16xf32> to vector<1x16xf32>
    %49 = vector.broadcast %45 : vector<8x1xf32> to vector<8x16xf32>
    %50 = vector.broadcast %48 : vector<1x16xf32> to vector<8x16xf32>
    %51 = arith.mulf %49, %50 : vector<8x16xf32>
    %52 = arith.addf %44, %51 : vector<8x16xf32>
    %53 = vector.extract_strided_slice %2 {offsets = [0, 6], sizes = [8, 1], strides = [1, 1]} : vector<8x12xf32> to vector<8x1xf32>
    %54 = vector.extract_strided_slice %1 {offsets = [2, 2], sizes = [1, 16], strides = [1, 1]} : vector<4x20xf32> to vector<1x16xf32>
    %55 = vector.shape_cast %54 : vector<1x16xf32> to vector<16xf32>
    %56 = vector.shape_cast %55 : vector<16xf32> to vector<1x16xf32>
    %57 = vector.broadcast %53 : vector<8x1xf32> to vector<8x16xf32>
    %58 = vector.broadcast %56 : vector<1x16xf32> to vector<8x16xf32>
    %59 = arith.mulf %57, %58 : vector<8x16xf32>
    %60 = arith.addf %52, %59 : vector<8x16xf32>
    %61 = vector.extract_strided_slice %2 {offsets = [0, 7], sizes = [8, 1], strides = [1, 1]} : vector<8x12xf32> to vector<8x1xf32>
    %62 = vector.extract_strided_slice %1 {offsets = [3, 2], sizes = [1, 16], strides = [1, 1]} : vector<4x20xf32> to vector<1x16xf32>
    %63 = vector.shape_cast %62 : vector<1x16xf32> to vector<16xf32>
    %64 = vector.shape_cast %63 : vector<16xf32> to vector<1x16xf32>
    %65 = vector.broadcast %61 : vector<8x1xf32> to vector<8x16xf32>
    %66 = vector.broadcast %64 : vector<1x16xf32> to vector<8x16xf32>
    %67 = arith.mulf %65, %66 : vector<8x16xf32>
    %68 = arith.addf %60, %67 : vector<8x16xf32>
    %69 = vector.extract_strided_slice %2 {offsets = [0, 8], sizes = [8, 1], strides = [1, 1]} : vector<8x12xf32> to vector<8x1xf32>
    %70 = vector.extract_strided_slice %1 {offsets = [0, 4], sizes = [1, 16], strides = [1, 1]} : vector<4x20xf32> to vector<1x16xf32>
    %71 = vector.shape_cast %70 : vector<1x16xf32> to vector<16xf32>
    %72 = vector.shape_cast %71 : vector<16xf32> to vector<1x16xf32>
    %73 = vector.broadcast %69 : vector<8x1xf32> to vector<8x16xf32>
    %74 = vector.broadcast %72 : vector<1x16xf32> to vector<8x16xf32>
    %75 = arith.mulf %73, %74 : vector<8x16xf32>
    %76 = arith.addf %68, %75 : vector<8x16xf32>
    %77 = vector.extract_strided_slice %2 {offsets = [0, 9], sizes = [8, 1], strides = [1, 1]} : vector<8x12xf32> to vector<8x1xf32>
    %78 = vector.extract_strided_slice %1 {offsets = [1, 4], sizes = [1, 16], strides = [1, 1]} : vector<4x20xf32> to vector<1x16xf32>
    %79 = vector.shape_cast %78 : vector<1x16xf32> to vector<16xf32>
    %80 = vector.shape_cast %79 : vector<16xf32> to vector<1x16xf32>
    %81 = vector.broadcast %77 : vector<8x1xf32> to vector<8x16xf32>
    %82 = vector.broadcast %80 : vector<1x16xf32> to vector<8x16xf32>
    %83 = arith.mulf %81, %82 : vector<8x16xf32>
    %84 = arith.addf %76, %83 : vector<8x16xf32>
    %85 = vector.extract_strided_slice %2 {offsets = [0, 10], sizes = [8, 1], strides = [1, 1]} : vector<8x12xf32> to vector<8x1xf32>
    %86 = vector.extract_strided_slice %1 {offsets = [2, 4], sizes = [1, 16], strides = [1, 1]} : vector<4x20xf32> to vector<1x16xf32>
    %87 = vector.shape_cast %86 : vector<1x16xf32> to vector<16xf32>
    %88 = vector.shape_cast %87 : vector<16xf32> to vector<1x16xf32>
    %89 = vector.broadcast %85 : vector<8x1xf32> to vector<8x16xf32>
    %90 = vector.broadcast %88 : vector<1x16xf32> to vector<8x16xf32>
    %91 = arith.mulf %89, %90 : vector<8x16xf32>
    %92 = arith.addf %84, %91 : vector<8x16xf32>
    %93 = vector.extract_strided_slice %2 {offsets = [0, 11], sizes = [8, 1], strides = [1, 1]} : vector<8x12xf32> to vector<8x1xf32>
    %94 = vector.extract_strided_slice %1 {offsets = [3, 4], sizes = [1, 16], strides = [1, 1]} : vector<4x20xf32> to vector<1x16xf32>
    %95 = vector.shape_cast %94 : vector<1x16xf32> to vector<16xf32>
    %96 = vector.shape_cast %95 : vector<16xf32> to vector<1x16xf32>
    %97 = vector.broadcast %93 : vector<8x1xf32> to vector<8x16xf32>
    %98 = vector.broadcast %96 : vector<1x16xf32> to vector<8x16xf32>
    %99 = arith.mulf %97, %98 : vector<8x16xf32>
    %100 = arith.addf %92, %99 : vector<8x16xf32>
    %c0_6 = arith.constant 0 : index
    %c0_7 = arith.constant 0 : index
    %101 = vector.load %arg3[%c0_6, %c0_7] : memref<8x1xf32, #tpu.memory_space<vmem>>, vector<8x1xf32>
    %102 = vector.broadcast %101 : vector<8x1xf32> to vector<8x16xf32>
    %103 = arith.addf %100, %102 : vector<8x16xf32>
    %cst_8 = arith.constant 0.000000e+00 : f32
    %104 = vector.broadcast %cst_8 : f32 to vector<8x16xf32>
    %105 = arith.maximumf %103, %104 : vector<8x16xf32>
    %cst_9 = arith.constant 0.000000e+00 : f32
    %106 = vector.broadcast %cst_9 : f32 to vector<8x4xf32>
    %107 = tpu.concatenate %106, %105 in 1 : vector<8x4xf32>, vector<8x16xf32> -> vector<8x20xf32>
    %cst_10 = arith.constant 0.000000e+00 : f32
    %108 = vector.broadcast %cst_10 : f32 to vector<8x16xf32>
    %109 = vector.extract_strided_slice %3 {offsets = [0, 0], sizes = [8, 1], strides = [1, 1]} : vector<8x24xf32> to vector<8x1xf32>
    %110 = vector.extract_strided_slice %107 {offsets = [0, 0], sizes = [1, 16], strides = [1, 1]} : vector<8x20xf32> to vector<1x16xf32>
    %111 = vector.shape_cast %110 : vector<1x16xf32> to vector<16xf32>
    %112 = vector.shape_cast %111 : vector<16xf32> to vector<1x16xf32>
    %113 = vector.broadcast %109 : vector<8x1xf32> to vector<8x16xf32>
    %114 = vector.broadcast %112 : vector<1x16xf32> to vector<8x16xf32>
    %115 = arith.mulf %113, %114 : vector<8x16xf32>
    %116 = arith.addf %108, %115 : vector<8x16xf32>
    %117 = vector.extract_strided_slice %3 {offsets = [0, 1], sizes = [8, 1], strides = [1, 1]} : vector<8x24xf32> to vector<8x1xf32>
    %118 = vector.extract_strided_slice %107 {offsets = [1, 0], sizes = [1, 16], strides = [1, 1]} : vector<8x20xf32> to vector<1x16xf32>
    %119 = vector.shape_cast %118 : vector<1x16xf32> to vector<16xf32>
    %120 = vector.shape_cast %119 : vector<16xf32> to vector<1x16xf32>
    %121 = vector.broadcast %117 : vector<8x1xf32> to vector<8x16xf32>
    %122 = vector.broadcast %120 : vector<1x16xf32> to vector<8x16xf32>
    %123 = arith.mulf %121, %122 : vector<8x16xf32>
    %124 = arith.addf %116, %123 : vector<8x16xf32>
    %125 = vector.extract_strided_slice %3 {offsets = [0, 2], sizes = [8, 1], strides = [1, 1]} : vector<8x24xf32> to vector<8x1xf32>
    %126 = vector.extract_strided_slice %107 {offsets = [2, 0], sizes = [1, 16], strides = [1, 1]} : vector<8x20xf32> to vector<1x16xf32>
    %127 = vector.shape_cast %126 : vector<1x16xf32> to vector<16xf32>
    %128 = vector.shape_cast %127 : vector<16xf32> to vector<1x16xf32>
    %129 = vector.broadcast %125 : vector<8x1xf32> to vector<8x16xf32>
    %130 = vector.broadcast %128 : vector<1x16xf32> to vector<8x16xf32>
    %131 = arith.mulf %129, %130 : vector<8x16xf32>
    %132 = arith.addf %124, %131 : vector<8x16xf32>
    %133 = vector.extract_strided_slice %3 {offsets = [0, 3], sizes = [8, 1], strides = [1, 1]} : vector<8x24xf32> to vector<8x1xf32>
    %134 = vector.extract_strided_slice %107 {offsets = [3, 0], sizes = [1, 16], strides = [1, 1]} : vector<8x20xf32> to vector<1x16xf32>
    %135 = vector.shape_cast %134 : vector<1x16xf32> to vector<16xf32>
    %136 = vector.shape_cast %135 : vector<16xf32> to vector<1x16xf32>
    %137 = vector.broadcast %133 : vector<8x1xf32> to vector<8x16xf32>
    %138 = vector.broadcast %136 : vector<1x16xf32> to vector<8x16xf32>
    %139 = arith.mulf %137, %138 : vector<8x16xf32>
    %140 = arith.addf %132, %139 : vector<8x16xf32>
    %141 = vector.extract_strided_slice %3 {offsets = [0, 4], sizes = [8, 1], strides = [1, 1]} : vector<8x24xf32> to vector<8x1xf32>
    %142 = vector.extract_strided_slice %107 {offsets = [4, 0], sizes = [1, 16], strides = [1, 1]} : vector<8x20xf32> to vector<1x16xf32>
    %143 = vector.shape_cast %142 : vector<1x16xf32> to vector<16xf32>
    %144 = vector.shape_cast %143 : vector<16xf32> to vector<1x16xf32>
    %145 = vector.broadcast %141 : vector<8x1xf32> to vector<8x16xf32>
    %146 = vector.broadcast %144 : vector<1x16xf32> to vector<8x16xf32>
    %147 = arith.mulf %145, %146 : vector<8x16xf32>
    %148 = arith.addf %140, %147 : vector<8x16xf32>
    %149 = vector.extract_strided_slice %3 {offsets = [0, 5], sizes = [8, 1], strides = [1, 1]} : vector<8x24xf32> to vector<8x1xf32>
    %150 = vector.extract_strided_slice %107 {offsets = [5, 0], sizes = [1, 16], strides = [1, 1]} : vector<8x20xf32> to vector<1x16xf32>
    %151 = vector.shape_cast %150 : vector<1x16xf32> to vector<16xf32>
    %152 = vector.shape_cast %151 : vector<16xf32> to vector<1x16xf32>
    %153 = vector.broadcast %149 : vector<8x1xf32> to vector<8x16xf32>
    %154 = vector.broadcast %152 : vector<1x16xf32> to vector<8x16xf32>
    %155 = arith.mulf %153, %154 : vector<8x16xf32>
    %156 = arith.addf %148, %155 : vector<8x16xf32>
    %157 = vector.extract_strided_slice %3 {offsets = [0, 6], sizes = [8, 1], strides = [1, 1]} : vector<8x24xf32> to vector<8x1xf32>
    %158 = vector.extract_strided_slice %107 {offsets = [6, 0], sizes = [1, 16], strides = [1, 1]} : vector<8x20xf32> to vector<1x16xf32>
    %159 = vector.shape_cast %158 : vector<1x16xf32> to vector<16xf32>
    %160 = vector.shape_cast %159 : vector<16xf32> to vector<1x16xf32>
    %161 = vector.broadcast %157 : vector<8x1xf32> to vector<8x16xf32>
    %162 = vector.broadcast %160 : vector<1x16xf32> to vector<8x16xf32>
    %163 = arith.mulf %161, %162 : vector<8x16xf32>
    %164 = arith.addf %156, %163 : vector<8x16xf32>
    %165 = vector.extract_strided_slice %3 {offsets = [0, 7], sizes = [8, 1], strides = [1, 1]} : vector<8x24xf32> to vector<8x1xf32>
    %166 = vector.extract_strided_slice %107 {offsets = [7, 0], sizes = [1, 16], strides = [1, 1]} : vector<8x20xf32> to vector<1x16xf32>
    %167 = vector.shape_cast %166 : vector<1x16xf32> to vector<16xf32>
    %168 = vector.shape_cast %167 : vector<16xf32> to vector<1x16xf32>
    %169 = vector.broadcast %165 : vector<8x1xf32> to vector<8x16xf32>
    %170 = vector.broadcast %168 : vector<1x16xf32> to vector<8x16xf32>
    %171 = arith.mulf %169, %170 : vector<8x16xf32>
    %172 = arith.addf %164, %171 : vector<8x16xf32>
    %173 = vector.extract_strided_slice %3 {offsets = [0, 8], sizes = [8, 1], strides = [1, 1]} : vector<8x24xf32> to vector<8x1xf32>
    %174 = vector.extract_strided_slice %107 {offsets = [0, 2], sizes = [1, 16], strides = [1, 1]} : vector<8x20xf32> to vector<1x16xf32>
    %175 = vector.shape_cast %174 : vector<1x16xf32> to vector<16xf32>
    %176 = vector.shape_cast %175 : vector<16xf32> to vector<1x16xf32>
    %177 = vector.broadcast %173 : vector<8x1xf32> to vector<8x16xf32>
    %178 = vector.broadcast %176 : vector<1x16xf32> to vector<8x16xf32>
    %179 = arith.mulf %177, %178 : vector<8x16xf32>
    %180 = arith.addf %172, %179 : vector<8x16xf32>
    %181 = vector.extract_strided_slice %3 {offsets = [0, 9], sizes = [8, 1], strides = [1, 1]} : vector<8x24xf32> to vector<8x1xf32>
    %182 = vector.extract_strided_slice %107 {offsets = [1, 2], sizes = [1, 16], strides = [1, 1]} : vector<8x20xf32> to vector<1x16xf32>
    %183 = vector.shape_cast %182 : vector<1x16xf32> to vector<16xf32>
    %184 = vector.shape_cast %183 : vector<16xf32> to vector<1x16xf32>
    %185 = vector.broadcast %181 : vector<8x1xf32> to vector<8x16xf32>
    %186 = vector.broadcast %184 : vector<1x16xf32> to vector<8x16xf32>
    %187 = arith.mulf %185, %186 : vector<8x16xf32>
    %188 = arith.addf %180, %187 : vector<8x16xf32>
    %189 = vector.extract_strided_slice %3 {offsets = [0, 10], sizes = [8, 1], strides = [1, 1]} : vector<8x24xf32> to vector<8x1xf32>
    %190 = vector.extract_strided_slice %107 {offsets = [2, 2], sizes = [1, 16], strides = [1, 1]} : vector<8x20xf32> to vector<1x16xf32>
    %191 = vector.shape_cast %190 : vector<1x16xf32> to vector<16xf32>
    %192 = vector.shape_cast %191 : vector<16xf32> to vector<1x16xf32>
    %193 = vector.broadcast %189 : vector<8x1xf32> to vector<8x16xf32>
    %194 = vector.broadcast %192 : vector<1x16xf32> to vector<8x16xf32>
    %195 = arith.mulf %193, %194 : vector<8x16xf32>
    %196 = arith.addf %188, %195 : vector<8x16xf32>
    %197 = vector.extract_strided_slice %3 {offsets = [0, 11], sizes = [8, 1], strides = [1, 1]} : vector<8x24xf32> to vector<8x1xf32>
    %198 = vector.extract_strided_slice %107 {offsets = [3, 2], sizes = [1, 16], strides = [1, 1]} : vector<8x20xf32> to vector<1x16xf32>
    %199 = vector.shape_cast %198 : vector<1x16xf32> to vector<16xf32>
    %200 = vector.shape_cast %199 : vector<16xf32> to vector<1x16xf32>
    %201 = vector.broadcast %197 : vector<8x1xf32> to vector<8x16xf32>
    %202 = vector.broadcast %200 : vector<1x16xf32> to vector<8x16xf32>
    %203 = arith.mulf %201, %202 : vector<8x16xf32>
    %204 = arith.addf %196, %203 : vector<8x16xf32>
    %205 = vector.extract_strided_slice %3 {offsets = [0, 12], sizes = [8, 1], strides = [1, 1]} : vector<8x24xf32> to vector<8x1xf32>
    %206 = vector.extract_strided_slice %107 {offsets = [4, 2], sizes = [1, 16], strides = [1, 1]} : vector<8x20xf32> to vector<1x16xf32>
    %207 = vector.shape_cast %206 : vector<1x16xf32> to vector<16xf32>
    %208 = vector.shape_cast %207 : vector<16xf32> to vector<1x16xf32>
    %209 = vector.broadcast %205 : vector<8x1xf32> to vector<8x16xf32>
    %210 = vector.broadcast %208 : vector<1x16xf32> to vector<8x16xf32>
    %211 = arith.mulf %209, %210 : vector<8x16xf32>
    %212 = arith.addf %204, %211 : vector<8x16xf32>
    %213 = vector.extract_strided_slice %3 {offsets = [0, 13], sizes = [8, 1], strides = [1, 1]} : vector<8x24xf32> to vector<8x1xf32>
    %214 = vector.extract_strided_slice %107 {offsets = [5, 2], sizes = [1, 16], strides = [1, 1]} : vector<8x20xf32> to vector<1x16xf32>
    %215 = vector.shape_cast %214 : vector<1x16xf32> to vector<16xf32>
    %216 = vector.shape_cast %215 : vector<16xf32> to vector<1x16xf32>
    %217 = vector.broadcast %213 : vector<8x1xf32> to vector<8x16xf32>
    %218 = vector.broadcast %216 : vector<1x16xf32> to vector<8x16xf32>
    %219 = arith.mulf %217, %218 : vector<8x16xf32>
    %220 = arith.addf %212, %219 : vector<8x16xf32>
    %221 = vector.extract_strided_slice %3 {offsets = [0, 14], sizes = [8, 1], strides = [1, 1]} : vector<8x24xf32> to vector<8x1xf32>
    %222 = vector.extract_strided_slice %107 {offsets = [6, 2], sizes = [1, 16], strides = [1, 1]} : vector<8x20xf32> to vector<1x16xf32>
    %223 = vector.shape_cast %222 : vector<1x16xf32> to vector<16xf32>
    %224 = vector.shape_cast %223 : vector<16xf32> to vector<1x16xf32>
    %225 = vector.broadcast %221 : vector<8x1xf32> to vector<8x16xf32>
    %226 = vector.broadcast %224 : vector<1x16xf32> to vector<8x16xf32>
    %227 = arith.mulf %225, %226 : vector<8x16xf32>
    %228 = arith.addf %220, %227 : vector<8x16xf32>
    %229 = vector.extract_strided_slice %3 {offsets = [0, 15], sizes = [8, 1], strides = [1, 1]} : vector<8x24xf32> to vector<8x1xf32>
    %230 = vector.extract_strided_slice %107 {offsets = [7, 2], sizes = [1, 16], strides = [1, 1]} : vector<8x20xf32> to vector<1x16xf32>
    %231 = vector.shape_cast %230 : vector<1x16xf32> to vector<16xf32>
    %232 = vector.shape_cast %231 : vector<16xf32> to vector<1x16xf32>
    %233 = vector.broadcast %229 : vector<8x1xf32> to vector<8x16xf32>
    %234 = vector.broadcast %232 : vector<1x16xf32> to vector<8x16xf32>
    %235 = arith.mulf %233, %234 : vector<8x16xf32>
    %236 = arith.addf %228, %235 : vector<8x16xf32>
    %237 = vector.extract_strided_slice %3 {offsets = [0, 16], sizes = [8, 1], strides = [1, 1]} : vector<8x24xf32> to vector<8x1xf32>
    %238 = vector.extract_strided_slice %107 {offsets = [0, 4], sizes = [1, 16], strides = [1, 1]} : vector<8x20xf32> to vector<1x16xf32>
    %239 = vector.shape_cast %238 : vector<1x16xf32> to vector<16xf32>
    %240 = vector.shape_cast %239 : vector<16xf32> to vector<1x16xf32>
    %241 = vector.broadcast %237 : vector<8x1xf32> to vector<8x16xf32>
    %242 = vector.broadcast %240 : vector<1x16xf32> to vector<8x16xf32>
    %243 = arith.mulf %241, %242 : vector<8x16xf32>
    %244 = arith.addf %236, %243 : vector<8x16xf32>
    %245 = vector.extract_strided_slice %3 {offsets = [0, 17], sizes = [8, 1], strides = [1, 1]} : vector<8x24xf32> to vector<8x1xf32>
    %246 = vector.extract_strided_slice %107 {offsets = [1, 4], sizes = [1, 16], strides = [1, 1]} : vector<8x20xf32> to vector<1x16xf32>
    %247 = vector.shape_cast %246 : vector<1x16xf32> to vector<16xf32>
    %248 = vector.shape_cast %247 : vector<16xf32> to vector<1x16xf32>
    %249 = vector.broadcast %245 : vector<8x1xf32> to vector<8x16xf32>
    %250 = vector.broadcast %248 : vector<1x16xf32> to vector<8x16xf32>
    %251 = arith.mulf %249, %250 : vector<8x16xf32>
    %252 = arith.addf %244, %251 : vector<8x16xf32>
    %253 = vector.extract_strided_slice %3 {offsets = [0, 18], sizes = [8, 1], strides = [1, 1]} : vector<8x24xf32> to vector<8x1xf32>
    %254 = vector.extract_strided_slice %107 {offsets = [2, 4], sizes = [1, 16], strides = [1, 1]} : vector<8x20xf32> to vector<1x16xf32>
    %255 = vector.shape_cast %254 : vector<1x16xf32> to vector<16xf32>
    %256 = vector.shape_cast %255 : vector<16xf32> to vector<1x16xf32>
    %257 = vector.broadcast %253 : vector<8x1xf32> to vector<8x16xf32>
    %258 = vector.broadcast %256 : vector<1x16xf32> to vector<8x16xf32>
    %259 = arith.mulf %257, %258 : vector<8x16xf32>
    %260 = arith.addf %252, %259 : vector<8x16xf32>
    %261 = vector.extract_strided_slice %3 {offsets = [0, 19], sizes = [8, 1], strides = [1, 1]} : vector<8x24xf32> to vector<8x1xf32>
    %262 = vector.extract_strided_slice %107 {offsets = [3, 4], sizes = [1, 16], strides = [1, 1]} : vector<8x20xf32> to vector<1x16xf32>
    %263 = vector.shape_cast %262 : vector<1x16xf32> to vector<16xf32>
    %264 = vector.shape_cast %263 : vector<16xf32> to vector<1x16xf32>
    %265 = vector.broadcast %261 : vector<8x1xf32> to vector<8x16xf32>
    %266 = vector.broadcast %264 : vector<1x16xf32> to vector<8x16xf32>
    %267 = arith.mulf %265, %266 : vector<8x16xf32>
    %268 = arith.addf %260, %267 : vector<8x16xf32>
    %269 = vector.extract_strided_slice %3 {offsets = [0, 20], sizes = [8, 1], strides = [1, 1]} : vector<8x24xf32> to vector<8x1xf32>
    %270 = vector.extract_strided_slice %107 {offsets = [4, 4], sizes = [1, 16], strides = [1, 1]} : vector<8x20xf32> to vector<1x16xf32>
    %271 = vector.shape_cast %270 : vector<1x16xf32> to vector<16xf32>
    %272 = vector.shape_cast %271 : vector<16xf32> to vector<1x16xf32>
    %273 = vector.broadcast %269 : vector<8x1xf32> to vector<8x16xf32>
    %274 = vector.broadcast %272 : vector<1x16xf32> to vector<8x16xf32>
    %275 = arith.mulf %273, %274 : vector<8x16xf32>
    %276 = arith.addf %268, %275 : vector<8x16xf32>
    %277 = vector.extract_strided_slice %3 {offsets = [0, 21], sizes = [8, 1], strides = [1, 1]} : vector<8x24xf32> to vector<8x1xf32>
    %278 = vector.extract_strided_slice %107 {offsets = [5, 4], sizes = [1, 16], strides = [1, 1]} : vector<8x20xf32> to vector<1x16xf32>
    %279 = vector.shape_cast %278 : vector<1x16xf32> to vector<16xf32>
    %280 = vector.shape_cast %279 : vector<16xf32> to vector<1x16xf32>
    %281 = vector.broadcast %277 : vector<8x1xf32> to vector<8x16xf32>
    %282 = vector.broadcast %280 : vector<1x16xf32> to vector<8x16xf32>
    %283 = arith.mulf %281, %282 : vector<8x16xf32>
    %284 = arith.addf %276, %283 : vector<8x16xf32>
    %285 = vector.extract_strided_slice %3 {offsets = [0, 22], sizes = [8, 1], strides = [1, 1]} : vector<8x24xf32> to vector<8x1xf32>
    %286 = vector.extract_strided_slice %107 {offsets = [6, 4], sizes = [1, 16], strides = [1, 1]} : vector<8x20xf32> to vector<1x16xf32>
    %287 = vector.shape_cast %286 : vector<1x16xf32> to vector<16xf32>
    %288 = vector.shape_cast %287 : vector<16xf32> to vector<1x16xf32>
    %289 = vector.broadcast %285 : vector<8x1xf32> to vector<8x16xf32>
    %290 = vector.broadcast %288 : vector<1x16xf32> to vector<8x16xf32>
    %291 = arith.mulf %289, %290 : vector<8x16xf32>
    %292 = arith.addf %284, %291 : vector<8x16xf32>
    %293 = vector.extract_strided_slice %3 {offsets = [0, 23], sizes = [8, 1], strides = [1, 1]} : vector<8x24xf32> to vector<8x1xf32>
    %294 = vector.extract_strided_slice %107 {offsets = [7, 4], sizes = [1, 16], strides = [1, 1]} : vector<8x20xf32> to vector<1x16xf32>
    %295 = vector.shape_cast %294 : vector<1x16xf32> to vector<16xf32>
    %296 = vector.shape_cast %295 : vector<16xf32> to vector<1x16xf32>
    %297 = vector.broadcast %293 : vector<8x1xf32> to vector<8x16xf32>
    %298 = vector.broadcast %296 : vector<1x16xf32> to vector<8x16xf32>
    %299 = arith.mulf %297, %298 : vector<8x16xf32>
    %300 = arith.addf %292, %299 : vector<8x16xf32>
    %c0_11 = arith.constant 0 : index
    %c0_12 = arith.constant 0 : index
    %301 = vector.load %arg5[%c0_11, %c0_12] : memref<8x1xf32, #tpu.memory_space<vmem>>, vector<8x1xf32>
    %302 = vector.broadcast %301 : vector<8x1xf32> to vector<8x16xf32>
    %303 = arith.addf %300, %302 : vector<8x16xf32>
    %cst_13 = arith.constant 0.000000e+00 : f32
    %304 = vector.broadcast %cst_13 : f32 to vector<8x16xf32>
    %305 = arith.maximumf %303, %304 : vector<8x16xf32>
    %c0_14 = arith.constant 0 : index
    %c0_15 = arith.constant 0 : index
    %c0_16 = arith.constant 0 : index
    %306 = vector.load %arg6[%c0_14, %c0_15, %c0_16] : memref<1x8x16xf32, #tpu.memory_space<vmem>>, vector<1x8x16xf32>
    %307 = vector.shape_cast %306 : vector<1x8x16xf32> to vector<8x16xf32>
    %308 = vector.shape_cast %305 : vector<8x16xf32> to vector<1x8x16xf32>
    tpu.vector_store %arg6[%c0_14, %c0_15, %c0_16], %308 {strides = array<i32>} : memref<1x8x16xf32, #tpu.memory_space<vmem>>, vector<1x8x16xf32>,
    return
  }
  func.func @transform_0(%arg0: i32) -> (i32, i32, i32) {
    %c0_i32 = arith.constant 0 : i32
    %c0_i32_0 = arith.constant 0 : i32
    %c0_i32_1 = arith.constant 0 : i32
    return %arg0, %c0_i32, %c0_i32_0 : i32, i32, i32
  }
  func.func @transform_1(%arg0: i32) -> (i32, i32) {
    %c0_i32 = arith.constant 0 : i32
    %c0_i32_0 = arith.constant 0 : i32
    %c0_i32_1 = arith.constant 0 : i32
    return %c0_i32, %c0_i32_0 : i32, i32
  }
  func.func @transform_2(%arg0: i32) -> (i32, i32) {
    %c0_i32 = arith.constant 0 : i32
    %c0_i32_0 = arith.constant 0 : i32
    %c0_i32_1 = arith.constant 0 : i32
    return %c0_i32, %c0_i32_0 : i32, i32
  }
  func.func @transform_3(%arg0: i32) -> (i32, i32) {
    %c0_i32 = arith.constant 0 : i32
    %c0_i32_0 = arith.constant 0 : i32
    %c0_i32_1 = arith.constant 0 : i32
    return %c0_i32, %c0_i32_0 : i32, i32
  }
  func.func @transform_4(%arg0: i32) -> (i32, i32) {
    %c0_i32 = arith.constant 0 : i32
    %c0_i32_0 = arith.constant 0 : i32
    %c0_i32_1 = arith.constant 0 : i32
    return %c0_i32, %c0_i32_0 : i32, i32
  }
  func.func @transform_5(%arg0: i32) -> (i32, i32, i32) {
    %c0_i32 = arith.constant 0 : i32
    %c0_i32_0 = arith.constant 0 : i32
    %c0_i32_1 = arith.constant 0 : i32
    return %arg0, %c0_i32, %c0_i32_0 : i32, i32, i32
  }
}

</mosaic_0001>

<bundles_post_ra>
// kernel: tpu_custom_call.1
= control target key start
LH: loop header
LB: loop body
LE: loop exit
PB: predicated region body
PF: predicated region fallthrough
CT: control target
= control target key end

     0   :  { %10 = vsyncpa [#allocation3], 0  ;;  %s1209_s0 = inlined_call_operand.vmem [shape: f32[2,4,20], index: 0, kind: input, shape index: {}]   ;;  %s1210_s1 = inlined_call_operand.vmem [shape: f32[8,12], index: 1, kind: input, shape index: {}]   ;;  %s1211_s2 = inlined_call_operand.vmem [shape: f32[8,1], index: 2, kind: input, shape index: {}]   ;;  %s1212_s3 = inlined_call_operand.hbm [shape: f32[8,24], index: 3, kind: input, shape index: {}]   ;;  %s1213_s4 = inlined_call_operand.vmem [shape: f32[8,1], index: 4, kind: input, shape index: {}]   ;;  %s1214_s5 = inlined_call_operand.hbm [shape: f32[2,8,16], index: 5, kind: output, shape index: {}]  }
   0x1   :  { %11 = vsyncpa [#allocation4], 0 }
   0x2   :  { %13 = vsyncpa [#allocation4 + $0x1], 0  ;;  %s985_s18 = smov 0   ;;  %s987_s19 = smov 0  }
   0x3   :  { %s989_s20 = smov 0   ;;  %s991_s21 = smov 0  }
   0x4 LB: > { %s1006_s22 = sadd.s32 4294967295, %s924_s21   ;;  %s707_s23 = sadd.s32 4294967294, %s924_s21   ;;  %s924_s21 = sphi %s991_s21, %s1222_s21   ;;  %s920_s20 = sphi %s989_s20, %s1221_s20   ;;  %s916_s19 = sphi %s987_s19, %s1220_s19   ;;  %s912_s18 = sphi %s985_s18, %s1219_s18  }
   0x5   : > { %s1010_s24 = sadd.s32 1, %s924_s21   ;;  %s136_s25 = sadd.s32 1, %s920_s20 }
   0x6   : > { %s133_s26 = ssub.s32 %s924_s21, %s1010_s24  ;;  %p146_p0 = scmp.ne.s32.totalorder %s920_s20, %s916_s19 }
   0x7   : > { %p134_p1 = scmp.eq.s32.totalorder %s133_s26, 0  ;;  %p147_p2 = scmp.eq.s32.totalorder %s1006_s22, 1 }
   0x8   : > { %p152_p3 = scmp.ne.s32.totalorder %s916_s19, %s912_s18  ;;  %p153_p4 = scmp.eq.s32.totalorder %s707_s23, 1 }
   0x9   : > { %s1021_s27 = scalar_select %p134_p1, %s920_s20, %s136_s25  }
   0xa   : > { %p1023_p5 = por %p147_p2, %p146_p0  ;;  %p1027_p6 = por %p153_p4, %p152_p3 }
   0xb   : > { %p708_p7 = scmp.ge.s32.totalorder %s924_s21, 1  ;;  %p160_p8 = scmp.lt.s32.totalorder %s924_s21, 3 }
   0xc   : > { %s1216_s29 = scalar_select %p1027_p6, 1, 0 }
   0xd   : > { %p733_p9 = scmp.eq.s32.totalorder %s1006_s22, 0  ;;  %p1034_p10 = pnand %p708_p7, %p160_p8 }
   0xe   : > { %s926_s6 = smov [#allocation2]  }
   0xf   : > { %s179_s7 = sshll.u32 %s926_s6, 4  ;;  %p725_p11 = pneg %p1034_p10  ;;  %s180_s7 = int_to_ptr.vmem [resolvable:$true] %s179_s7 }
  0x10   : > { %s845_s8 = scalar_lea.vmem %s180_s7, 128  ;;  %p853_p3 = scmp.lt.s32.totalorder %s180_s7, %s180_s7 }
  0x11   : > { %p726_p12 = pnand %p733_p9, %p725_p11  ;;  %p846_p0 = scmp.ne.s32.totalorder %s180_s7, %s845_s8 }
  0x12   : > { %p854_p4 = scmp.lt.s32.totalorder %s845_s8, %s845_s8 }
  0x13   : > { %p836_p13 = pneg %p726_p12 }
  0x14   : > { %p855_p6 = por %p854_p4, %p853_p3 }
  0x15   : > { %p848_p1 = pnand %p846_p0, %p836_p13 }
  0x17   : > { %p849_p2 = pneg %p848_p1 }
  0x19   : > { %p856_p7 = pnand %p855_p6, %p849_p2 }
  0x1b   : > { %859 = shalt.err (!%p856_p7)
}
  0x1c   : > { %728 = dma.hbm_to_vmem [thread:$0]  (!%p726_p12), %s1212_s3, 128, %s180_s7, [#allocation3]  }
  0x1d   : > { %202 = sbr.rel (%p1034_p10) target bundleno = 602 (0x25a), region = 40 }
  0x22   : > { %903 = dma.done.wait (%p733_p9), [#allocation3], 128  }
  0x23   : > { %905 = vsyncadd (%p733_p9), [#allocation3], 4294967168  ;;  %v927_v0 = vmov 6   ;;  %v928_v1 = vmov 4   ;;  %v234_v2 = vld [vmem:[%s1210_s1] sm:$0xff]  ;;  %v929_v3 = vmov 7   ;;  %v241_v13 = vlaneseq }
  0x24   : > { %798 = vset.pattern.permute.xlu1 %v927_v0  ;;  %796 = vset.pattern.permute.xlu0 %v928_v1  ;;  %v930_v4 = vmov 5   ;;  %v931_v5 = vmov 8   ;;  %v932_v6 = vmov 9   ;;  %v933_v7 = vmov 10   ;;  %p229_p6 = scmp.lt.s32.totalorder %s1006_s22, 1  ;;  %s939_s23 = smov 126  }
  0x25   : > { %298 = vperm.xlu1 %798, %v234_v2   ;;  %278 = vperm.xlu0 %796, %v234_v2   ;;  %v934_v8 = vmov 0   ;;  %v935_v9 = vmov 11   ;;  %v936_v10 = vmov 3   ;;  %v937_v11 = vmov 1   ;;  %s940_s25 = smov 124   ;;  %v357_v36 = vld [vmem:[%s1211_s2] sm:$0xff] }
  0x26   : > { %v938_v12 = vmov 2   ;;  %s230_s13 = scalar_select %p229_p6, %s1006_s22, 1  ;;  %v1068_v14 = vshrl.u32 %v241_v13, 7  ;;  %v1094_v39 = vld [vmem:[#allocation2] sm:$0xff]  ;;  %v941_v49 = vmov 13   ;;  %v942_v54 = vmov 16  }
  0x27   : > { %v943_v55 = vmov 12   ;;  %v944_v56 = vmov 19   ;;  %v945_v57 = vmov 14   ;;  %v946_v58 = vmov 22   ;;  %s947_s6 = smov 4   ;;  %s226_s9 = sand.u32 1, %s916_s19  }
  0x28   : > { %s714_s14 = sshll.u32 %s230_s13, 2  ;;  %v263_v15 = vsub.s32 2, %v1068_v14  ;;  %v243_v16 = vsub.s32 0, %v1068_v14  ;;  %v253_v20 = vsub.s32 1, %v1068_v14  ;;  %v273_v25 = vsub.s32 3, %v1068_v14  ;;  %s713_s10 = sshll.u32 %s226_s9, 3 }
  0x29   : > { %799 = vset.pattern.permute.xlu1 %v929_v3  ;;  %797 = vset.pattern.permute.xlu0 %v930_v4  ;;  %s232_s17 = scalar_lea.vmem %s1209_s0, %s714_s14  ;;  %vm369_vm0 = vcmask 31744   ;;  %s716_s11 = sshll.u32 %s1006_s22, 7  ;;  %vm620_vm1 = vcmask 130048  }
  0x2a   : > { %308 = vperm.xlu1 %799, %v234_v2   ;;  %288 = vperm.xlu0 %797, %v234_v2   ;;  %v233_v17 = vld [vmem:[%s232_s17] sm:$0xf]  ;;  %s228_s12 = scalar_lea.vmem [#allocation5], %s713_s10  ;;  %s634_s16 = scalar_lea.hbm %s1214_s5, %s716_s11 }
  0x2b   : > { %v264_v18 = vrot.slane %v233_v17, %v263_v15  ;;  %v244_v19 = vrot.slane %v233_v17, %v243_v16  ;;  %v254_v26 = vrot.slane %v233_v17, %v253_v20  ;;  %v274_v29 = vrot.slane %v233_v17, %v273_v25  ;;  %s636_s13 = sshll.u32 %s228_s12, 4  ;;  %s623_s17 = scalar_lea.sflag [#allocation4], %s226_s9  ;;  %s637_s13 = int_to_ptr.vmem [resolvable:$true] %s636_s13 }
  0x2e   : > { %800 = vset.pattern.permute.xlu1 %v931_v5  ;;  %801 = vset.pattern.permute.xlu0 %v932_v6 }
  0x2f   : > { %318 = vperm.xlu1 %800, %v234_v2   ;;  %328 = vperm.xlu0 %801, %v234_v2  }
  0x33   : > { %802 = vset.pattern.permute.xlu1 %v933_v7  ;;  %804 = vset.pattern.permute.xlu0 %v934_v8 }
  0x34   : > { %338 = vperm.xlu1 %802, %v234_v2   ;;  %238 = vperm.xlu0 %804, %v234_v2  }
  0x38   : > { %803 = vset.pattern.permute.xlu1 %v935_v9  ;;  %807 = vset.pattern.permute.xlu0 %v936_v10 }
  0x39   : > { %348 = vperm.xlu1 %803, %v234_v2   ;;  %268 = vperm.xlu0 %807, %v234_v2  }
  0x3d   : > { %805 = vset.pattern.permute.xlu1 %v937_v11  ;;  %808 = vset.pattern.permute.xlu0 %v934_v8 }
  0x3e   : > { %248 = vperm.xlu1 %805, %v234_v2  }
  0x42   : > { %806 = vset.pattern.permute.xlu1 %v938_v12 }
  0x43   : > { %258 = vperm.xlu1 %806, %v234_v2  }
  0x47   : > { %810 = vset.pattern.permute.xlu1 %v932_v6 }
  0xa0   : > { %v299_v21 = vpop.permute.xlu1 %298  ;;  %v279_v22 = vpop.permute.xlu0 %278 }
  0xa1   : > { %v301_v23 = vmul.f32 %v299_v21, %v264_v18  ;;  %v281_v24 = vmul.f32 %v279_v22, %v244_v19 }
  0xa3   : > { %303 = vrot.lane.b32.xlu0 %v301_v23, %s939_s23  ;;  %283 = vrot.lane.b32.xlu1 %v281_v24, %s939_s23  ;;  %v948_v23 = vmov 15   ;;  %v949_v24 = vmov 17  }
  0xa5   : > { %v309_v27 = vpop.permute.xlu1 %308  ;;  %v289_v28 = vpop.permute.xlu0 %288 }
  0xa6   : > { %v291_v30 = vmul.f32 %v289_v28, %v254_v26  ;;  %v311_v31 = vmul.f32 %v309_v27, %v274_v29  ;;  %v951_v27 = vmov 20   ;;  %v952_v28 = vmov 21  }
  0xa8   : > { %293 = vrot.lane.b32.xlu1 %v291_v30, %s939_s23 }
  0xaa   : > { %v319_v32 = vpop.permute.xlu1 %318  ;;  %v329_v33 = vpop.permute.xlu0 %328 }
  0xab   : > { %v321_v34 = vmul.f32 %v319_v32, %v244_v19  ;;  %v331_v35 = vmul.f32 %v329_v33, %v254_v26  ;;  %v418_v33 = vsub.s32 4, %v1068_v14 }
  0xac   : > { %313 = vrot.lane.b32.xlu1 %v311_v31, %s939_s23 }
  0xad   : > { %323 = vrot.lane.b32.xlu0 %v321_v34, %s940_s25 }
  0xaf   : > { %v339_v37 = vpop.permute.xlu1 %338  ;;  %v239_v42 = vpop.permute.xlu0 %238 }
  0xb0   : > { %v341_v38 = vmul.f32 %v339_v37, %v264_v18  ;;  %333 = vrot.lane.b32.xlu1 %v331_v35, %s940_s25  ;;  %v245_v43 = vmul.f32 %v244_v19, %v239_v42 }
  0xb1   : > { %360 = vperm.xlu0 %808, %v357_v36  }
  0xb4   : > { %343 = vrot.lane.b32.xlu1 %v341_v38, %s940_s25  ;;  %v349_v40 = vpop.permute.xlu1 %348  ;;  %v269_v47 = vpop.permute.xlu0 %268 }
  0xb5   : > { %v351_v41 = vmul.f32 %v349_v40, %v274_v29  ;;  %809 = vset.pattern.permute.xlu0 %v931_v5  ;;  %v275_v51 = vmul.f32 %v274_v29, %v269_v47  ;;  %v953_v29 = vmov 23  }
  0xb6   : > { %453 = vperm.xlu0 %809, %v1094_v39  }
  0xb8   : > { %353 = vrot.lane.b32.xlu1 %v351_v41, %s940_s25  ;;  %v428_v41 = vsub.s32 5, %v1068_v14 }
  0xb9   : > { %v249_v44 = vpop.permute.xlu1 %248 }
  0xba   : > { %811 = vset.pattern.permute.xlu0 %v933_v7  ;;  %v255_v45 = vmul.f32 %v254_v26, %v249_v44  ;;  %v950_v26 = vmov 18  }
  0xbb   : > { %473 = vperm.xlu0 %811, %v1094_v39  }
  0xbc   : > { %v256_v46 = vadd.f32 %v255_v45, %v245_v43  ;;  %463 = vperm.xlu1 %810, %v1094_v39   ;;  %v448_v45 = vsub.s32 7, %v1068_v14 }
  0xbe   : > { %v259_v48 = vpop.permute.xlu1 %258 }
  0xbf   : > { %814 = vset.pattern.permute.xlu0 %v941_v49  ;;  %v265_v50 = vmul.f32 %v264_v18, %v259_v48 }
  0xc0   : > { %503 = vperm.xlu0 %814, %v1094_v39   ;;  %812 = vset.pattern.permute.xlu1 %v935_v9 }
  0xc1   : > { %v266_v52 = vadd.f32 %v265_v50, %v256_v46  ;;  %483 = vperm.xlu1 %812, %v1094_v39  }
  0xc3   : > { %v276_v53 = vadd.f32 %v275_v51, %v266_v52 }
  0xc4   : > { %817 = vset.pattern.permute.xlu0 %v942_v54 }
  0xc5   : > { %533 = vperm.xlu0 %817, %v1094_v39   ;;  %813 = vset.pattern.permute.xlu1 %v943_v55 }
  0xc6   : > { %493 = vperm.xlu1 %813, %v1094_v39  }
  0xc9   : > { %820 = vset.pattern.permute.xlu0 %v944_v56 }
  0xca   : > { %563 = vperm.xlu0 %820, %v1094_v39   ;;  %815 = vset.pattern.permute.xlu1 %v945_v57 }
  0xce   : > { %823 = vset.pattern.permute.xlu0 %v946_v58 }
  0xcf   : > { %593 = vperm.xlu0 %823, %v1094_v39  }
  0xd3   : > { %826 = vset.pattern.permute.xlu0 %v937_v11 }
  0xd4   : > { %383 = vperm.xlu0 %826, %v1094_v39  }
  0xd8   : > { %829 = vset.pattern.permute.xlu0 %v928_v1 }
  0xd9   : > { %413 = vperm.xlu0 %829, %v1094_v39  }
  0xdd   : > { %832 = vset.pattern.permute.xlu0 %v929_v3 }
  0xde   : > { %443 = vperm.xlu0 %832, %v1094_v39  }
  0xe2   : > { %833 = vset.pattern.permute.xlu0 %v934_v8 }
 0x115   : > { %v284_v59 = vpop.permute.xlu1 %283  ;;  %v304_v63 = vpop.permute.xlu0 %303 }
 0x116   : > { %v286_v60 = vadd.f32 %v284_v59, %v276_v53 }
 0x11a   : > { %v294_v61 = vpop.permute.xlu1 %293 }
 0x11b   : > { %v296_v62 = vadd.f32 %v294_v61, %v286_v60  ;;  %v612_v60 = vld [vmem:[%s1213_s4] sm:$0xff] }
 0x11d   : > { %v306_v2 = vadd.f32 %v304_v63, %v296_v62 }
 0x11e   : > { %v314_v5 = vpop.permute.xlu1 %313 }
 0x11f   : > { %v316_v6 = vadd.f32 %v314_v5, %v306_v2  ;;  %v324_v7 = vpop.permute.xlu0 %323 }
 0x121   : > { %v326_v11 = vadd.f32 %v324_v7, %v316_v6 }
 0x122   : > { %v334_v9 = vpop.permute.xlu1 %333 }
 0x123   : > { %v336_v13 = vadd.f32 %v334_v9, %v326_v11 }
 0x126   : > { %v344_v1 = vpop.permute.xlu1 %343 }
 0x127   : > { %v346_v17 = vadd.f32 %v344_v1, %v336_v13 }
 0x12a   : > { %v354_v18 = vpop.permute.xlu1 %353 }
 0x12b   : > { %v356_v3 = vadd.f32 %v354_v18, %v346_v17 }
 0x12c   : > { %v361_v19 = vpop.permute.xlu0 %360 }
 0x12d   : > { %v363_v21 = vadd.f32 %v361_v19, %v356_v3 }
 0x12f   : > { %v364_v22 = vmax.f32 %v363_v21, 0.0 }
 0x131   : > { %366 = vrot.lane.b32.xlu1 %v364_v22, %s947_s6  ;;  %v454_v32 = vpop.permute.xlu0 %453 }
 0x135   : > { %513 = vperm.xlu1 %815, %v1094_v39  }
 0x136   : > { %v474_v35 = vpop.permute.xlu0 %473 }
 0x137   : > { %v464_v30 = vpop.permute.xlu1 %463 }
 0x139   : > { %816 = vset.pattern.permute.xlu1 %v948_v23 }
 0x13a   : > { %523 = vperm.xlu1 %816, %v1094_v39  }
 0x13b   : > { %v504_v42 = vpop.permute.xlu0 %503 }
 0x13e   : > { %818 = vset.pattern.permute.xlu1 %v949_v24 }
 0x13f   : > { %543 = vperm.xlu1 %818, %v1094_v39  }
 0x143   : > { %819 = vset.pattern.permute.xlu1 %v950_v26 }
 0x144   : > { %553 = vperm.xlu1 %819, %v1094_v39  }
 0x148   : > { %821 = vset.pattern.permute.xlu1 %v951_v27 }
 0x149   : > { %573 = vperm.xlu1 %821, %v1094_v39  }
 0x14d   : > { %822 = vset.pattern.permute.xlu1 %v952_v28 }
 0x14e   : > { %583 = vperm.xlu1 %822, %v1094_v39  }
 0x152   : > { %824 = vset.pattern.permute.xlu1 %v953_v29 }
 0x153   : > { %603 = vperm.xlu1 %824, %v1094_v39  }
 0x157   : > { %825 = vset.pattern.permute.xlu1 %v934_v8  ;;  %v484_v8 = vpop.permute.xlu1 %483 }
 0x158   : > { %373 = vperm.xlu1 %825, %v1094_v39  }
 0x15b   : > { %v494_v31 = vpop.permute.xlu1 %493 }
 0x15c   : > { %827 = vset.pattern.permute.xlu1 %v938_v12 }
 0x15d   : > { %393 = vperm.xlu1 %827, %v1094_v39  }
 0x161   : > { %828 = vset.pattern.permute.xlu1 %v936_v10 }
 0x162   : > { %403 = vperm.xlu1 %828, %v1094_v39  }
 0x166   : > { %830 = vset.pattern.permute.xlu1 %v930_v4 }
 0x167   : > { %423 = vperm.xlu1 %830, %v1094_v39  }
 0x16b   : > { %831 = vset.pattern.permute.xlu1 %v927_v0 }
 0x16c   : > { %433 = vperm.xlu1 %831, %v1094_v39   ;;  %v438_v39 = vsub.s32 6, %v1068_v14 }
 0x1a3   : > { %v367_v12 = vpop.permute.xlu1 %366 }
 0x1a4   : > { %v370_v34 = vsel %vm369_vm0, 0.0, %v367_v12 }
 0x1a5   : > { %v1137_v10 = vrot.slane %v370_v34, %v263_v15  ;;  %v379_v4 = vrot.slane %v370_v34, %v243_v16  ;;  %v1142_v37 = vrot.slane %v370_v34, %v418_v33  ;;  %v389_v38 = vrot.slane %v370_v34, %v253_v20 }
 0x1a6   : > { %v409_v16 = vrot.slane %v370_v34, %v273_v25  ;;  %v439_v20 = vrot.slane %v370_v34, %v438_v39  ;;  %v429_v44 = vrot.slane %v370_v34, %v428_v41  ;;  %v534_v25 = vpop.permute.xlu0 %533  ;;  %v449_v49 = vrot.slane %v370_v34, %v448_v45 }
 0x1a7   : > { %v476_v0 = vmul.f32 %v474_v35, %v1137_v10  ;;  %v456_v36 = vmul.f32 %v454_v32, %v379_v4  ;;  %v496_v15 = vmul.f32 %v494_v31, %v1142_v37  ;;  %v466_v40 = vmul.f32 %v464_v30, %v389_v38 }
 0x1a8   : > { %v486_v43 = vmul.f32 %v484_v8, %v409_v16  ;;  %v506_v48 = vmul.f32 %v504_v42, %v429_v44  ;;  %v536_v51 = vmul.f32 %v534_v25, %v379_v4 }
 0x1a9   : > { %478 = vrot.lane.b32.xlu0 %v476_v0, %s939_s23  ;;  %458 = vrot.lane.b32.xlu1 %v456_v36, %s939_s23 }
 0x1aa   : > { %v564_v54 = vpop.permute.xlu0 %563 }
 0x1ab   : > { %v566_v56 = vmul.f32 %v564_v54, %v409_v16 }
 0x1ad   : > { %498 = vrot.lane.b32.xlu0 %v496_v15, %s939_s23  ;;  %468 = vrot.lane.b32.xlu1 %v466_v40, %s939_s23 }
 0x1ae   : > { %v594_v63 = vpop.permute.xlu0 %593 }
 0x1af   : > { %v596_v5 = vmul.f32 %v594_v63, %v439_v20 }
 0x1b0   : > { %v514_v46 = vpop.permute.xlu1 %513 }
 0x1b1   : > { %v516_v47 = vmul.f32 %v514_v46, %v439_v20  ;;  %488 = vrot.lane.b32.xlu1 %v486_v43, %s939_s23 }
 0x1b2   : > { %v384_v7 = vpop.permute.xlu0 %383 }
 0x1b3   : > { %518 = vrot.lane.b32.xlu0 %v516_v47, %s939_s23  ;;  %v390_v11 = vmul.f32 %v389_v38, %v384_v7 }
 0x1b5   : > { %508 = vrot.lane.b32.xlu1 %v506_v48, %s939_s23  ;;  %v524_v50 = vpop.permute.xlu1 %523 }
 0x1b6   : > { %v526_v52 = vmul.f32 %v524_v50, %v449_v49  ;;  %v414_v22 = vpop.permute.xlu0 %413 }
 0x1b7   : > { %538 = vrot.lane.b32.xlu0 %v536_v51, %s940_s25  ;;  %v420_v24 = vmul.f32 %v1142_v37, %v414_v22 }
 0x1b9   : > { %528 = vrot.lane.b32.xlu1 %v526_v52, %s939_s23  ;;  %s860_s23 = scalar_lea.vmem %s637_s13, 128 }
 0x1ba   : > { %v544_v53 = vpop.permute.xlu1 %543  ;;  %v444_v30 = vpop.permute.xlu0 %443  ;;  %p861_p8 = scmp.ne.s32.totalorder %s637_s13, %s860_s23 }
 0x1bb   : > { %v546_v14 = vmul.f32 %v544_v53, %v389_v38  ;;  %v450_v32 = vmul.f32 %v449_v49, %v444_v30 }
 0x1bc   : > { %p862_p9 = pnand %p861_p8, %p1023_p5 }
 0x1bd   : > { %548 = vrot.lane.b32.xlu1 %v546_v14, %s940_s25 }
 0x1be   : > { %p863_p10 = pneg %p862_p9 }
 0x1bf   : > { %v554_v55 = vpop.permute.xlu1 %553 }
 0x1c0   : > { %v556_v57 = vmul.f32 %v554_v55, %v1137_v10 }
 0x1c1   : > { %568 = vrot.lane.b32.xlu1 %v566_v56, %s940_s25 }
 0x1c2   : > { %558 = vrot.lane.b32.xlu0 %v556_v57, %s940_s25 }
 0x1c4   : > { %v574_v58 = vpop.permute.xlu1 %573 }
 0x1c5   : > { %v576_v59 = vmul.f32 %v574_v58, %v1142_v37 }
 0x1c7   : > { %578 = vrot.lane.b32.xlu0 %v576_v59, %s940_s25 }
 0x1c9   : > { %v584_v61 = vpop.permute.xlu1 %583 }
 0x1ca   : > { %v586_v62 = vmul.f32 %v584_v61, %v429_v44 }
 0x1cb   : > { %615 = vperm.xlu0 %833, %v612_v60  }
 0x1cc   : > { %588 = vrot.lane.b32.xlu1 %v586_v62, %s940_s25 }
 0x1ce   : > { %v604_v2 = vpop.permute.xlu1 %603 }
 0x1cf   : > { %v606_v6 = vmul.f32 %v604_v2, %v449_v49 }
 0x1d0   : > { %598 = vrot.lane.b32.xlu1 %v596_v5, %s940_s25 }
 0x1d3   : > { %v374_v9 = vpop.permute.xlu1 %373 }
 0x1d4   : > { %v380_v1 = vmul.f32 %v379_v4, %v374_v9  ;;  %608 = vrot.lane.b32.xlu1 %v606_v6, %s940_s25  ;;  %s954_s25 = smov [#allocation5]  }
 0x1d5   : > { %s864_s26 = sshll.u32 %s954_s25, 4  ;;  %s865_s26 = int_to_ptr.vmem [resolvable:$false] %s864_s26 }
 0x1d6   : > { %v391_v13 = vadd.f32 %v390_v11, %v380_v1  ;;  %s866_s22 = scalar_lea.vmem %s865_s26, 256  ;;  %p867_p11 = scmp.lt.s32.totalorder %s637_s13, %s865_s26 }
 0x1d7   : > { %p868_p12 = scmp.lt.s32.totalorder %s866_s22, %s860_s23 }
 0x1d8   : > { %v394_v17 = vpop.permute.xlu1 %393 }
 0x1d9   : > { %v400_v18 = vmul.f32 %v1137_v10, %v394_v17  ;;  %p869_p13 = por %p868_p12, %p867_p11 }
 0x1db   : > { %v401_v3 = vadd.f32 %v400_v18, %v391_v13  ;;  %p870_p0 = pnand %p869_p13, %p863_p10 }
 0x1dd   : > { %v404_v19 = vpop.permute.xlu1 %403 }
 0x1de   : > { %v410_v21 = vmul.f32 %v409_v16, %v404_v19 }
 0x1e0   : > { %v411_v23 = vadd.f32 %v410_v21, %v401_v3 }
 0x1e2   : > { %v421_v26 = vadd.f32 %v420_v24, %v411_v23  ;;  %v424_v27 = vpop.permute.xlu1 %423 }
 0x1e3   : > { %v430_v28 = vmul.f32 %v429_v44, %v424_v27 }
 0x1e5   : > { %v431_v29 = vadd.f32 %v430_v28, %v421_v26 }
 0x1e7   : > { %v434_v8 = vpop.permute.xlu1 %433 }
 0x1e8   : > { %v440_v31 = vmul.f32 %v439_v20, %v434_v8 }
 0x1ea   : > { %v441_v12 = vadd.f32 %v440_v31, %v431_v29 }
 0x1ec   : > { %v451_v33 = vadd.f32 %v450_v32, %v441_v12 }
 0x21b   : > { %v459_v34 = vpop.permute.xlu1 %458  ;;  %v479_v10 = vpop.permute.xlu0 %478 }
 0x21c   : > { %v461_v4 = vadd.f32 %v459_v34, %v451_v33 }
 0x21f   : > { %v469_v35 = vpop.permute.xlu1 %468  ;;  %v499_v15 = vpop.permute.xlu0 %498 }
 0x220   : > { %v471_v0 = vadd.f32 %v469_v35, %v461_v4 }
 0x222   : > { %v481_v36 = vadd.f32 %v479_v10, %v471_v0 }
 0x223   : > { %v489_v38 = vpop.permute.xlu1 %488 }
 0x224   : > { %v491_v39 = vadd.f32 %v489_v38, %v481_v36 }
 0x225   : > { %v519_v41 = vpop.permute.xlu0 %518 }
 0x226   : > { %v501_v37 = vadd.f32 %v499_v15, %v491_v39 }
 0x227   : > { %v509_v40 = vpop.permute.xlu1 %508 }
 0x228   : > { %v511_v16 = vadd.f32 %v509_v40, %v501_v37 }
 0x229   : > { %v539_v44 = vpop.permute.xlu0 %538 }
 0x22a   : > { %v521_v42 = vadd.f32 %v519_v41, %v511_v16 }
 0x22b   : > { %v529_v43 = vpop.permute.xlu1 %528 }
 0x22c   : > { %v531_v20 = vadd.f32 %v529_v43, %v521_v42 }
 0x22e   : > { %v541_v45 = vadd.f32 %v539_v44, %v531_v20 }
 0x22f   : > { %v549_v46 = vpop.permute.xlu1 %548 }
 0x230   : > { %v551_v48 = vadd.f32 %v549_v46, %v541_v45 }
 0x233   : > { %v569_v49 = vpop.permute.xlu1 %568 }
 0x234   : > { %v559_v47 = vpop.permute.xlu0 %558 }
 0x235   : > { %v561_v25 = vadd.f32 %v559_v47, %v551_v48 }
 0x237   : > { %v571_v50 = vadd.f32 %v569_v49, %v561_v25 }
 0x239   : > { %v579_v51 = vpop.permute.xlu0 %578 }
 0x23a   : > { %v581_v53 = vadd.f32 %v579_v51, %v571_v50 }
 0x23e   : > { %v589_v52 = vpop.permute.xlu1 %588 }
 0x23f   : > { %v591_v54 = vadd.f32 %v589_v52, %v581_v53 }
 0x242   : > { %v599_v14 = vpop.permute.xlu1 %598 }
 0x243   : > { %v601_v55 = vadd.f32 %v599_v14, %v591_v54 }
 0x246   : > { %v609_v56 = vpop.permute.xlu1 %608  ;;  %v616_v57 = vpop.permute.xlu0 %615 }
 0x247   : > { %v611_v58 = vadd.f32 %v609_v56, %v601_v55 }
 0x249   : > { %v618_v59 = vadd.f32 %v616_v57, %v611_v58 }
 0x24b   : > { %v619_v60 = vmax.f32 %v618_v59, 0.0 }
 0x24d   : > { %621 = vst.msk [vmem:[%s228_s12] sm:$0xff] %vm620_vm1, %v619_v60 }
 0x24e   : > { %873 = shalt.err (!%p870_p0)
}
 0x24f   : > { %s874_s30 = scalar_lea.hbm %s634_s16, 128  ;;  %s878_s8 = scalar_lea.hbm %s1214_s5, 256 }
 0x250   : > { %p875_p1 = scmp.ne.s32.totalorder %s634_s16, %s874_s30  ;;  %p879_p4 = scmp.lt.s32.totalorder %s634_s16, %s1214_s5 }
 0x251   : > { %p880_p7 = scmp.lt.s32.totalorder %s878_s8, %s874_s30 }
 0x252   : > { %p876_p2 = pnand %p875_p1, %p1023_p5 }
 0x253   : > { %p881_p6 = por %p880_p7, %p879_p4 }
 0x254   : > { %p877_p3 = pneg %p876_p2 }
 0x256   : > { %p882_p8 = pnand %p881_p6, %p877_p3 }
 0x258   : > { %885 = shalt.err (!%p882_p8)
}
 0x259   : > { %723 = dma.vmem_to_hbm [thread:$0]  (%p1023_p5), %s637_s13, 128, %s634_s16, %s623_s17  }
 0x25a PF: > { %p735_p9 = scmp.ge.s32.totalorder %s924_s21, 2  ;;  %s648_s11 = sand.u32 1, %s912_s18  }
 0x25b   : > { %p1218_p10 = scmp.ne.s32.totalorder %s1216_s29, 0  ;;  %s649_s12 = scalar_lea.sflag [#allocation4], %s648_s11 }
 0x25d   : > { %p730_p11 = pnand %p735_p9, %p1218_p10 }
 0x25f   : > { %p731_p12 = pneg %p730_p11 }
 0x261   : > { %907 = dma.done.wait (%p731_p12), %s649_s12, 128  }
 0x262   : > { %909 = vsyncadd (%p731_p12), %s649_s12, 4294967168  ;;  %p16_p13 = scmp.ge.s32.totalorder %s1010_s24, 4   ;;  %s1219_s18 = smov %s916_s19 }
 0x263   : > { %s1220_s19 = smov %s920_s20  ;;  %s1221_s20 = smov %s1021_s27 }
 0x264   : > { %s1222_s21 = smov %s1010_s24  ;;  %18 = sbr.rel (!%p16_p13) target bundleno = 4 (0x4), region = 80 }
 0x269   :  { %654 = vsyncpa [#allocation3], 1 }
 0x26a   :  { %656 = vsyncpa [#allocation3 + $0x1], 1 }
 0x26b   :  { %657 = vsyncpa [#allocation4], 1 }
 0x26c   :  { %659 = vsyncpa [#allocation4 + $0x1], 1 }

</bundles_post_ra>
